<compile_context>
chip_gen: v6e
topology: v6e:2x2x1
jax: 0.10.0
libtpu: 0.0.40
codegen_flags: <defaults>
</compile_context>

<pallas_src>
import functools

import jax
import jax.numpy as jnp
import numpy as np
from jax.experimental import pallas as pl
from jax.experimental.pallas import tpu as pltpu


def _choose_tile_hw(hw, c):
    """Lane-dense HW tile (multiple of 128), ~2 MiB of box_cls per block."""
    target = (2 * 1024 * 1024) // (max(c, 4) * 4)
    t = max(128, min(8192, target))
    t = (t // 128) * 128
    hw_lane = ((hw + 127) // 128) * 128
    return min(t, hw_lane)


def _fcos_level_kernel(imsize_ref,     # SMEM (N, 2) int32, rows (h, w)
                       loc_ref,        # VMEM (4, T), rows (x, y, x, y)
                       cls_ref,        # VMEM (1, C, T)
                       reg_ref,        # VMEM (1, 4, T), rows (l, t, r, b)
                       ctr_ref,        # VMEM (1, 1, T)
                       scores_ref,     # VMEM (1, C, T)  masked scores (-1 = not cand)
                       boxes_ref,      # VMEM (1, 4, T)  f32 decoded + clipped boxes
                       keep_ref,       # VMEM (1, 1, T)  int8 remove_small_boxes mask
                       count_ref,      # VMEM (1, 1, 1)  int32, accumulated over HW tiles
                       *, pre_nms_thresh, pre_nms_top_n, min_size, hw_valid, tile_hw):
    i = pl.program_id(0)
    j = pl.program_id(1)
    n_tiles = pl.num_programs(1)

    h = imsize_ref[i, 0].astype(jnp.float32)
    w = imsize_ref[i, 1].astype(jnp.float32)

    # Validity mask for the tail padding of the flattened spatial axis.
    lane = jax.lax.broadcasted_iota(jnp.int32, (1, tile_hw), 1) + j * tile_hw
    valid = lane < hw_valid                                  # (1, T) bool

    # ---- classification / centerness (compute f32, store narrow) ----------
    s = jax.nn.sigmoid(cls_ref[0].astype(jnp.float32))       # (C, T)
    c = jax.nn.sigmoid(ctr_ref[0].astype(jnp.float32))       # (1, T)

    cand = (s > pre_nms_thresh) & valid                      # thresh_mode == 0
    # Candidate mask fused into the scores tensor: -1.0 marks non-candidates.
    scores_ref[0] = jnp.where(cand, jnp.sqrt(s * c), -1.0).astype(scores_ref.dtype)

    # Per-image candidate count accumulated across HW tiles, clamped at the end.
    # Per-tile float sum is exact (tile has < 2^24 elements); cross-tile
    # accumulation is done in int32.
    tile_count = jnp.sum(cand.astype(jnp.float32)).astype(jnp.int32)

    @pl.when(j == 0)
    def _():
        count_ref[...] = jnp.zeros_like(count_ref)

    count_ref[...] = count_ref[...] + tile_count

    @pl.when(j == n_tiles - 1)
    def _():
        count_ref[...] = jnp.minimum(count_ref[...], jnp.int32(pre_nms_top_n))

    # ---- box decoding + clip_to_image (TO_REMOVE = 1), one (4, T) pass -----
    loc = loc_ref[...].astype(jnp.float32)                   # (4, T): x, y, x, y
    reg = reg_ref[0].astype(jnp.float32)                     # (4, T): l, t, r, b
    row = jax.lax.broadcasted_iota(jnp.int32, (4, 1), 0)
    sign = jnp.where(row < 2, -1.0, 1.0)                     # (-1, -1, +1, +1)
    lim = jnp.where(row % 2 == 0, w - 1.0, h - 1.0)          # (w-1, h-1, w-1, h-1)
    boxes = jnp.clip(loc + sign * reg, 0.0, lim)             # (4, T)
    boxes_ref[0] = boxes.astype(boxes_ref.dtype)

    # ---- remove_small_boxes keep mask --------------------------------------
    ws = boxes[2:3, :] - boxes[0:1, :] + 1.0
    hs = boxes[3:4, :] - boxes[1:2, :] + 1.0
    keep = (ws >= min_size) & (hs >= min_size) & valid
    keep_ref[0] = keep.astype(keep_ref.dtype)


def fcos_level_pallas(locations, box_cls, box_regression, centerness, image_sizes, *,
                      pre_nms_thresh, pre_nms_top_n, min_size,
                      scores_dtype=jnp.bfloat16, tile_hw=None):
    """Dense part of FCOSPostProcessor.forward_for_single_feature_map."""
    N, C, H, W = box_cls.shape
    HW = H * W
    if tile_hw is None:
        tile_hw = _choose_tile_hw(HW, C)
    n_tiles = (HW + tile_hw - 1) // tile_hw
    HW_pad = n_tiles * tile_hw

    # Free NCHW flatten; keep native dtypes (cast happens inside the kernel).
    cls3 = box_cls.reshape(N, C, HW)
    reg3 = box_regression.reshape(N, 4, HW)
    ctr3 = centerness.reshape(N, 1, HW)
    loc2 = locations.T                                        # (2, HW): x row, y row
    loc4 = jnp.concatenate([loc2, loc2], axis=0)              # (4, HW): x, y, x, y

    if HW_pad != HW:
        pad = HW_pad - HW
        cls3 = jnp.pad(cls3, ((0, 0), (0, 0), (0, pad)))
        reg3 = jnp.pad(reg3, ((0, 0), (0, 0), (0, pad)))
        ctr3 = jnp.pad(ctr3, ((0, 0), (0, 0), (0, pad)))
        loc4 = jnp.pad(loc4, ((0, 0), (0, pad)))

    imsize = image_sizes.astype(jnp.int32)                    # (N, 2) -> SMEM prefetch

    kernel = functools.partial(
        _fcos_level_kernel,
        pre_nms_thresh=float(pre_nms_thresh),
        pre_nms_top_n=int(pre_nms_top_n),
        min_size=float(min_size),
        hw_valid=int(HW),
        tile_hw=int(tile_hw),
    )

    out_shapes = (
        jax.ShapeDtypeStruct((N, C, HW_pad), scores_dtype),   # masked sqrt(cls*ctr) scores
        jax.ShapeDtypeStruct((N, 4, HW_pad), jnp.float32),    # decoded & clipped boxes
        jax.ShapeDtypeStruct((N, 1, HW_pad), jnp.int8),       # keep mask (remove_small_boxes)
        jax.ShapeDtypeStruct((N, 1, 1), jnp.int32),           # clamped pre_nms_top_n / image
    )

    grid_spec = pltpu.PrefetchScalarGridSpec(
        num_scalar_prefetch=1,                                # image_sizes -> SMEM
        grid=(N, n_tiles),
        in_specs=[
            pl.BlockSpec((4, tile_hw), lambda i, j, sz: (0, j)),
            pl.BlockSpec((1, C, tile_hw), lambda i, j, sz: (i, 0, j)),
            pl.BlockSpec((1, 4, tile_hw), lambda i, j, sz: (i, 0, j)),
            pl.BlockSpec((1, 1, tile_hw), lambda i, j, sz: (i, 0, j)),
        ],
        out_specs=[
            pl.BlockSpec((1, C, tile_hw), lambda i, j, sz: (i, 0, j)),
            pl.BlockSpec((1, 4, tile_hw), lambda i, j, sz: (i, 0, j)),
            pl.BlockSpec((1, 1, tile_hw), lambda i, j, sz: (i, 0, j)),
            pl.BlockSpec((1, 1, 1), lambda i, j, sz: (i, 0, 0)),   # per-image accumulator
        ],
    )

    scores, boxes, keep, count = pl.pallas_call(
        kernel,
        out_shape=out_shapes,
        grid_spec=grid_spec,
        compiler_params=pltpu.CompilerParams(
            # HW axis carries the count accumulator -> "arbitrary"; images are independent.
            dimension_semantics=("parallel", "arbitrary"),
            vmem_limit_bytes=32 * 1024 * 1024,
        ),
    )(imsize, loc4, cls3, reg3, ctr3)

    if HW_pad != HW:
        scores = scores[..., :HW]
        boxes = boxes[..., :HW]
        keep = keep[..., :HW]
    return scores, boxes, keep, count


class FCOSPostProcessorPallas:
    """JAX/Pallas port of FCOSPostProcessor (dense compute only)."""

    def __init__(self, pre_nms_thresh, pre_nms_top_n, nms_thresh,
                 fpn_post_nms_top_n, min_size, num_classes, thresh_mode=0,
                 scores_dtype=jnp.bfloat16):
        self.pre_nms_thresh = pre_nms_thresh
        self.pre_nms_top_n = pre_nms_top_n
        self.nms_thresh = nms_thresh
        self.fpn_post_nms_top_n = fpn_post_nms_top_n
        self.min_size = min_size
        self.num_classes = num_classes
        self.thresh_mode = thresh_mode
        self.scores_dtype = scores_dtype

    def forward(self, locations, box_cls, box_regression, centerness, image_sizes):
        # TODO(synk): thresh_mode == 1 (threshold scaled by the global box_cls max)
        # needs a cross-level reduction and is not implemented; only mode 0 is.
        # TODO(synk): small FPN levels could be padded+concatenated into a single
        # pallas_call to amortize launch overhead (needs per-level count bookkeeping).
        results = []
        for loc, cls, reg, ctr in zip(locations, box_cls, box_regression, centerness):
            results.append(
                fcos_level_pallas(
                    loc, cls, reg, ctr, image_sizes,
                    pre_nms_thresh=self.pre_nms_thresh,
                    pre_nms_top_n=self.pre_nms_top_n,
                    min_size=self.min_size,
                    scores_dtype=self.scores_dtype,
                )
            )
        # TODO(synk): the data-dependent steps -- nonzero gather of candidates,
        # per-image topk, per-class boxlist_nms, cat_boxlist and the kthvalue-based
        # fpn_post_nms_top_n filter -- have no dense Pallas equivalent; the kernel
        # returns dense masked scores/boxes/keep/count tensors they would consume.
        return results


def compute_locations(H, W, stride):
    """FCOS location grid, order matches permute(0,2,3,1).reshape (h*W + w)."""
    ys = jnp.arange(H, dtype=jnp.float32) * stride + stride // 2
    xs = jnp.arange(W, dtype=jnp.float32) * stride + stride // 2
    yy, xx = jnp.meshgrid(ys, xs, indexing="ij")
    return jnp.stack([xx.reshape(-1), yy.reshape(-1)], axis=-1)  # (HW, 2)


def _reference_level(loc, cls, reg, ctr, image_sizes,
                     pre_nms_thresh, pre_nms_top_n, min_size):
    """Pure-JAX reference of the dense FCOS per-level computation."""
    N, C, H, W = cls.shape
    HW = H * W
    s = jax.nn.sigmoid(cls.reshape(N, C, HW).astype(jnp.float32))
    c = jax.nn.sigmoid(ctr.reshape(N, 1, HW).astype(jnp.float32))
    cand = s > pre_nms_thresh
    scores = jnp.where(cand, jnp.sqrt(s * c), -1.0)
    count = jnp.minimum(cand.reshape(N, -1).sum(-1), pre_nms_top_n)
    count = count.astype(jnp.int32).reshape(N, 1, 1)

    x = loc[:, 0].reshape(1, 1, HW)
    y = loc[:, 1].reshape(1, 1, HW)
    r = reg.reshape(N, 4, HW).astype(jnp.float32)
    h = image_sizes[:, 0].astype(jnp.float32).reshape(N, 1, 1)
    w = image_sizes[:, 1].astype(jnp.float32).reshape(N, 1, 1)
    x1 = jnp.clip(x - r[:, 0:1], 0.0, w - 1.0)
    y1 = jnp.clip(y - r[:, 1:2], 0.0, h - 1.0)
    x2 = jnp.clip(x + r[:, 2:3], 0.0, w - 1.0)
    y2 = jnp.clip(y + r[:, 3:4], 0.0, h - 1.0)
    boxes = jnp.concatenate([x1, y1, x2, y2], axis=1)
    keep = ((x2 - x1 + 1.0 >= min_size) & (y2 - y1 + 1.0 >= min_size)).astype(jnp.int8)
    return scores, boxes, keep, count


if __name__ == "__main__":
    key = jax.random.PRNGKey(0)
    N = 2
    num_classes = 5            # includes background -> C = 4 classification channels
    C = num_classes - 1

    # Two small FPN levels (the second has HW=64, exercising the lane-padding path).
    level_shapes = [(16, 16, 8), (8, 8, 16)]   # (H, W, stride)

    locations, box_cls, box_regression, centerness = [], [], [], []
    for (H, W, stride) in level_shapes:
        key, k1, k2, k3 = jax.random.split(key, 4)
        locations.append(compute_locations(H, W, stride))
        box_cls.append(jax.random.normal(k1, (N, C, H, W), jnp.float32))
        box_regression.append(
            jnp.abs(jax.random.normal(k2, (N, 4, H, W), jnp.float32)) * stride)
        centerness.append(jax.random.normal(k3, (N, 1, H, W), jnp.float32))

    image_sizes = jnp.array([[120, 128], [100, 112]], dtype=jnp.int32)  # (h, w)

    post = FCOSPostProcessorPallas(
        pre_nms_thresh=0.5,
        pre_nms_top_n=100,
        nms_thresh=0.6,
        fpn_post_nms_top_n=50,
        min_size=0,
        num_classes=num_classes,
        thresh_mode=0,
    )

    outs = post.forward(locations, box_cls, box_regression, centerness, image_sizes)
    outs = jax.block_until_ready(outs)

    # Shape checks + correctness against the pure-JAX reference.
    for (H, W, _), (scores, boxes, keep, count), loc, cls, reg, ctr in zip(
            level_shapes, outs, locations, box_cls, box_regression, centerness):
        HW = H * W
        assert scores.shape == (N, C, HW) and scores.dtype == jnp.bfloat16
        assert boxes.shape == (N, 4, HW) and boxes.dtype == jnp.float32
        assert keep.shape == (N, 1, HW) and keep.dtype == jnp.int8
        assert count.shape == (N, 1, 1) and count.dtype == jnp.int32

        r_scores, r_boxes, r_keep, r_count = _reference_level(
            loc, cls, reg, ctr, image_sizes,
            pre_nms_thresh=0.5, pre_nms_top_n=100, min_size=0)
        np.testing.assert_allclose(np.asarray(scores, dtype=np.float32),
                                   np.asarray(r_scores), atol=1e-2, rtol=1e-2)
        np.testing.assert_allclose(np.asarray(boxes), np.asarray(r_boxes),
                                   atol=1e-4, rtol=1e-5)
        np.testing.assert_array_equal(np.asarray(keep), np.asarray(r_keep))
        np.testing.assert_array_equal(np.asarray(count), np.asarray(r_count))

    print("KERNEL_OK")
</pallas_src>

<mosaic_0001>
module attributes {stable_mosaic.version = 11 : i64} {
  func.func @_fcos_level_kernel(%arg0: i32, %arg1: i32, %arg2: memref<2x2xi32, #tpu.memory_space<smem>>, %arg3: memref<4x256xf32, #tpu.memory_space<vmem>>, %arg4: memref<1x4x256xf32, #tpu.memory_space<vmem>>, %arg5: memref<1x4x256xf32, #tpu.memory_space<vmem>>, %arg6: memref<1x1x256xf32, #tpu.memory_space<vmem>>, %arg7: memref<1x4x256xbf16, #tpu.memory_space<vmem>>, %arg8: memref<1x4x256xf32, #tpu.memory_space<vmem>>, %arg9: memref<1x1x256xi8, #tpu.memory_space<vmem>>, %arg10: memref<1x1x1xi32, #tpu.memory_space<vmem>>) attributes {dimension_semantics = [#tpu.dimension_semantics<parallel>, #tpu.dimension_semantics<arbitrary>], iteration_bounds = array<i64: 2, 1>, scalar_prefetch = 1 : i64, scratch_operands = 0 : i64, tpu.core_type = #tpu.core_type<tc>, window_params = [{transform_indices = @transform_0, window_bounds = array<i64: 4, 256>}, {transform_indices = @transform_1, window_bounds = array<i64: 1, 4, 256>}, {transform_indices = @transform_2, window_bounds = array<i64: 1, 4, 256>}, {transform_indices = @transform_3, window_bounds = array<i64: 1, 1, 256>}, {transform_indices = @transform_4, window_bounds = array<i64: 1, 4, 256>}, {transform_indices = @transform_5, window_bounds = array<i64: 1, 4, 256>}, {transform_indices = @transform_6, window_bounds = array<i64: 1, 1, 256>}, {transform_indices = @transform_7, window_bounds = array<i64: 1, 1, 1>}]} {
    %0 = arith.index_cast %arg0 : i32 to index
    %c0 = arith.constant 0 : index
    %1 = memref.load %arg2[%0, %c0] : memref<2x2xi32, #tpu.memory_space<smem>>
    %2 = arith.sitofp %1 : i32 to f32
    %3 = arith.index_cast %arg0 : i32 to index
    %c1 = arith.constant 1 : index
    %4 = memref.load %arg2[%3, %c1] : memref<2x2xi32, #tpu.memory_space<smem>>
    %5 = arith.sitofp %4 : i32 to f32
    %6 = tpu.iota {dimensions = array<i32: 1>} : vector<1x256xi32>
    %c256_i32 = arith.constant 256 : i32
    %7 = arith.muli %arg1, %c256_i32 : i32
    %8 = vector.broadcast %7 : i32 to vector<1x256xi32>
    %9 = arith.addi %6, %8 : vector<1x256xi32>
    %c256_i32_0 = arith.constant 256 : i32
    %10 = vector.broadcast %c256_i32_0 : i32 to vector<1x256xi32>
    %11 = arith.cmpi slt, %9, %10 : vector<1x256xi32>
    %c0_1 = arith.constant 0 : index
    %c0_2 = arith.constant 0 : index
    %c0_3 = arith.constant 0 : index
    %12 = vector.load %arg4[%c0_1, %c0_2, %c0_3] : memref<1x4x256xf32, #tpu.memory_space<vmem>>, vector<1x4x256xf32>
    %13 = vector.shape_cast %12 : vector<1x4x256xf32> to vector<4x256xf32>
    %14 = arith.negf %13 : vector<4x256xf32>
    %15 = math.exp %14 : vector<4x256xf32>
    %cst = arith.constant 1.000000e+00 : f32
    %16 = vector.broadcast %cst : f32 to vector<4x256xf32>
    %17 = arith.addf %16, %15 : vector<4x256xf32>
    %18 = arith.divf %16, %17 : vector<4x256xf32>
    %c0_4 = arith.constant 0 : index
    %c0_5 = arith.constant 0 : index
    %c0_6 = arith.constant 0 : index
    %19 = vector.load %arg6[%c0_4, %c0_5, %c0_6] : memref<1x1x256xf32, #tpu.memory_space<vmem>>, vector<1x1x256xf32>
    %20 = vector.shape_cast %19 : vector<1x1x256xf32> to vector<1x256xf32>
    %21 = arith.negf %20 : vector<1x256xf32>
    %22 = math.exp %21 : vector<1x256xf32>
    %cst_7 = arith.constant 1.000000e+00 : f32
    %23 = vector.broadcast %cst_7 : f32 to vector<1x256xf32>
    %24 = arith.addf %23, %22 : vector<1x256xf32>
    %25 = arith.divf %23, %24 : vector<1x256xf32>
    %cst_8 = arith.constant 5.000000e-01 : f32
    %26 = vector.broadcast %cst_8 : f32 to vector<4x256xf32>
    %27 = arith.cmpf ogt, %18, %26 : vector<4x256xf32>
    %28 = vector.broadcast %11 : vector<1x256xi1> to vector<4x256xi1>
    %29 = arith.andi %27, %28 : vector<4x256xi1>
    %30 = vector.broadcast %25 : vector<1x256xf32> to vector<4x256xf32>
    %31 = arith.mulf %18, %30 : vector<4x256xf32>
    %32 = math.sqrt %31 : vector<4x256xf32>
    %cst_9 = arith.constant -1.000000e+00 : f32
    %33 = vector.broadcast %cst_9 : f32 to vector<4x256xf32>
    %34 = arith.select %29, %32, %33 : vector<4x256xi1>, vector<4x256xf32>
    %35 = arith.truncf %34 : vector<4x256xf32> to vector<4x256xbf16>
    %c0_10 = arith.constant 0 : index
    %c0_11 = arith.constant 0 : index
    %c0_12 = arith.constant 0 : index
    %36 = vector.load %arg7[%c0_10, %c0_11, %c0_12] : memref<1x4x256xbf16, #tpu.memory_space<vmem>>, vector<1x4x256xbf16>
    %37 = vector.shape_cast %36 : vector<1x4x256xbf16> to vector<4x256xbf16>
    %38 = vector.shape_cast %35 : vector<4x256xbf16> to vector<1x4x256xbf16>
    tpu.vector_store %arg7[%c0_10, %c0_11, %c0_12], %38 {strides = array<i32>} : memref<1x4x256xbf16, #tpu.memory_space<vmem>>, vector<1x4x256xbf16>,
    %39 = arith.extui %29 : vector<4x256xi1> to vector<4x256xi32>
    %40 = arith.sitofp %39 : vector<4x256xi32> to vector<4x256xf32>
    %41 = vector.shape_cast %40 : vector<4x256xf32> to vector<1x4x256xf32>
    %cst_13 = arith.constant dense<0.000000e+00> : vector<1xf32>
    %42 = vector.multi_reduction <add>, %41, %cst_13 [1, 2] : vector<1x4x256xf32> to vector<1xf32>
    %43 = vector.shape_cast %42 : vector<1xf32> to vector<1x1x1xf32>
    %44 = vector.extract %43[0, 0, 0] : f32 from vector<1x1x1xf32>
    %45 = arith.fptosi %44 : f32 to i32
    %c0_i32 = arith.constant 0 : i32
    %46 = arith.cmpi eq, %arg1, %c0_i32 : i32
    %47 = arith.extui %46 : i1 to i32
    %c0_i32_14 = arith.constant 0 : i32
    %48 = arith.cmpi ne, %47, %c0_i32_14 : i32
    scf.if %48 {
      %c0_i32_49 = arith.constant 0 : i32
      %118 = vector.broadcast %c0_i32_49 : i32 to vector<1x1x1xi32>
      %c0_50 = arith.constant 0 : index
      %c0_51 = arith.constant 0 : index
      %c0_52 = arith.constant 0 : index
      %119 = vector.load %arg10[%c0_50, %c0_51, %c0_52] : memref<1x1x1xi32, #tpu.memory_space<vmem>>, vector<1x1x1xi32>
      tpu.vector_store %arg10[%c0_50, %c0_51, %c0_52], %118 {strides = array<i32>} : memref<1x1x1xi32, #tpu.memory_space<vmem>>, vector<1x1x1xi32>,
    } else {
    }
    %c0_15 = arith.constant 0 : index
    %c0_16 = arith.constant 0 : index
    %c0_17 = arith.constant 0 : index
    %49 = vector.load %arg10[%c0_15, %c0_16, %c0_17] : memref<1x1x1xi32, #tpu.memory_space<vmem>>, vector<1x1x1xi32>
    %50 = vector.broadcast %45 : i32 to vector<1x1x1xi32>
    %51 = arith.addi %49, %50 : vector<1x1x1xi32>
    %c0_18 = arith.constant 0 : index
    %c0_19 = arith.constant 0 : index
    %c0_20 = arith.constant 0 : index
    %52 = vector.load %arg10[%c0_18, %c0_19, %c0_20] : memref<1x1x1xi32, #tpu.memory_space<vmem>>, vector<1x1x1xi32>
    tpu.vector_store %arg10[%c0_18, %c0_19, %c0_20], %51 {strides = array<i32>} : memref<1x1x1xi32, #tpu.memory_space<vmem>>, vector<1x1x1xi32>,
    %c0_i32_21 = arith.constant 0 : i32
    %53 = arith.cmpi eq, %arg1, %c0_i32_21 : i32
    %54 = arith.extui %53 : i1 to i32
    %c0_i32_22 = arith.constant 0 : i32
    %55 = arith.cmpi ne, %54, %c0_i32_22 : i32
    scf.if %55 {
      %c0_49 = arith.constant 0 : index
      %c0_50 = arith.constant 0 : index
      %c0_51 = arith.constant 0 : index
      %118 = vector.load %arg10[%c0_49, %c0_50, %c0_51] : memref<1x1x1xi32, #tpu.memory_space<vmem>>, vector<1x1x1xi32>
      %c100_i32 = arith.constant 100 : i32
      %119 = vector.broadcast %c100_i32 : i32 to vector<1x1x1xi32>
      %120 = arith.minsi %118, %119 : vector<1x1x1xi32>
      %c0_52 = arith.constant 0 : index
      %c0_53 = arith.constant 0 : index
      %c0_54 = arith.constant 0 : index
      %121 = vector.load %arg10[%c0_52, %c0_53, %c0_54] : memref<1x1x1xi32, #tpu.memory_space<vmem>>, vector<1x1x1xi32>
      tpu.vector_store %arg10[%c0_52, %c0_53, %c0_54], %120 {strides = array<i32>} : memref<1x1x1xi32, #tpu.memory_space<vmem>>, vector<1x1x1xi32>,
    } else {
    }
    %c0_23 = arith.constant 0 : index
    %c0_24 = arith.constant 0 : index
    %56 = vector.load %arg3[%c0_23, %c0_24] : memref<4x256xf32, #tpu.memory_space<vmem>>, vector<4x256xf32>
    %c0_25 = arith.constant 0 : index
    %c0_26 = arith.constant 0 : index
    %c0_27 = arith.constant 0 : index
    %57 = vector.load %arg5[%c0_25, %c0_26, %c0_27] : memref<1x4x256xf32, #tpu.memory_space<vmem>>, vector<1x4x256xf32>
    %58 = vector.shape_cast %57 : vector<1x4x256xf32> to vector<4x256xf32>
    %59 = tpu.iota {dimensions = array<i32: 0>} : vector<4x1xi32>
    %c2_i32 = arith.constant 2 : i32
    %60 = vector.broadcast %c2_i32 : i32 to vector<4x1xi32>
    %61 = arith.cmpi slt, %59, %60 : vector<4x1xi32>
    %cst_28 = arith.constant -1.000000e+00 : f32
    %cst_29 = arith.constant 1.000000e+00 : f32
    %62 = vector.broadcast %cst_28 : f32 to vector<4x1xf32>
    %63 = vector.broadcast %cst_29 : f32 to vector<4x1xf32>
    %64 = arith.select %61, %62, %63 : vector<4x1xi1>, vector<4x1xf32>
    %c2_i32_30 = arith.constant 2 : i32
    %c0_i32_31 = arith.constant 0 : i32
    %65 = arith.cmpi eq, %c2_i32_30, %c0_i32_31 : i32
    %c1_i32 = arith.constant 1 : i32
    %66 = arith.select %65, %c1_i32, %c2_i32_30 : i32
    %67 = vector.broadcast %66 : i32 to vector<4x1xi32>
    %68 = arith.remsi %59, %67 : vector<4x1xi32>
    %c0_i32_32 = arith.constant 0 : i32
    %69 = vector.broadcast %c0_i32_32 : i32 to vector<4x1xi32>
    %70 = arith.cmpi ne, %68, %69 : vector<4x1xi32>
    %c0_i32_33 = arith.constant 0 : i32
    %71 = vector.broadcast %c0_i32_33 : i32 to vector<4x1xi32>
    %72 = arith.cmpi slt, %68, %71 : vector<4x1xi32>
    %c0_i32_34 = arith.constant 0 : i32
    %73 = arith.cmpi slt, %66, %c0_i32_34 : i32
    %74 = vector.broadcast %73 : i1 to vector<4x1xi1>
    %75 = vector.broadcast %74 : vector<4x1xi1> to vector<4x1xi1>
    %76 = arith.xori %72, %75 : vector<4x1xi1>
    %77 = arith.andi %76, %70 : vector<4x1xi1>
    %78 = vector.broadcast %66 : i32 to vector<4x1xi32>
    %79 = arith.addi %68, %78 : vector<4x1xi32>
    %80 = arith.select %77, %79, %68 : vector<4x1xi1>, vector<4x1xi32>
    %c0_i32_35 = arith.constant 0 : i32
    %81 = vector.broadcast %c0_i32_35 : i32 to vector<4x1xi32>
    %82 = arith.cmpi eq, %80, %81 : vector<4x1xi32>
    %cst_36 = arith.constant 1.000000e+00 : f32
    %83 = arith.subf %5, %cst_36 : f32
    %cst_37 = arith.constant 1.000000e+00 : f32
    %84 = arith.subf %2, %cst_37 : f32
    %85 = vector.broadcast %83 : f32 to vector<4x1xf32>
    %86 = vector.broadcast %84 : f32 to vector<4x1xf32>
    %87 = arith.select %82, %85, %86 : vector<4x1xi1>, vector<4x1xf32>
    %88 = vector.broadcast %64 : vector<4x1xf32> to vector<4x256xf32>
    %89 = arith.mulf %88, %58 : vector<4x256xf32>
    %90 = arith.addf %56, %89 : vector<4x256xf32>
    %cst_38 = arith.constant 0.000000e+00 : f32
    %91 = vector.broadcast %cst_38 : f32 to vector<4x256xf32>
    %92 = arith.maximumf %91, %90 : vector<4x256xf32>
    %93 = vector.broadcast %87 : vector<4x1xf32> to vector<4x256xf32>
    %94 = arith.minimumf %93, %92 : vector<4x256xf32>
    %c0_39 = arith.constant 0 : index
    %c0_40 = arith.constant 0 : index
    %c0_41 = arith.constant 0 : index
    %95 = vector.load %arg8[%c0_39, %c0_40, %c0_41] : memref<1x4x256xf32, #tpu.memory_space<vmem>>, vector<1x4x256xf32>
    %96 = vector.shape_cast %95 : vector<1x4x256xf32> to vector<4x256xf32>
    %97 = vector.shape_cast %94 : vector<4x256xf32> to vector<1x4x256xf32>
    tpu.vector_store %arg8[%c0_39, %c0_40, %c0_41], %97 {strides = array<i32>} : memref<1x4x256xf32, #tpu.memory_space<vmem>>, vector<1x4x256xf32>,
    %98 = vector.extract_strided_slice %94 {offsets = [2, 0], sizes = [1, 256], strides = [1, 1]} : vector<4x256xf32> to vector<1x256xf32>
    %99 = vector.extract_strided_slice %94 {offsets = [0, 0], sizes = [1, 256], strides = [1, 1]} : vector<4x256xf32> to vector<1x256xf32>
    %100 = arith.subf %98, %99 : vector<1x256xf32>
    %cst_42 = arith.constant 1.000000e+00 : f32
    %101 = vector.broadcast %cst_42 : f32 to vector<1x256xf32>
    %102 = arith.addf %100, %101 : vector<1x256xf32>
    %103 = vector.extract_strided_slice %94 {offsets = [3, 0], sizes = [1, 256], strides = [1, 1]} : vector<4x256xf32> to vector<1x256xf32>
    %104 = vector.extract_strided_slice %94 {offsets = [1, 0], sizes = [1, 256], strides = [1, 1]} : vector<4x256xf32> to vector<1x256xf32>
    %105 = arith.subf %103, %104 : vector<1x256xf32>
    %cst_43 = arith.constant 1.000000e+00 : f32
    %106 = vector.broadcast %cst_43 : f32 to vector<1x256xf32>
    %107 = arith.addf %105, %106 : vector<1x256xf32>
    %cst_44 = arith.constant 0.000000e+00 : f32
    %108 = vector.broadcast %cst_44 : f32 to vector<1x256xf32>
    %109 = arith.cmpf oge, %102, %108 : vector<1x256xf32>
    %cst_45 = arith.constant 0.000000e+00 : f32
    %110 = vector.broadcast %cst_45 : f32 to vector<1x256xf32>
    %111 = arith.cmpf oge, %107, %110 : vector<1x256xf32>
    %112 = arith.andi %109, %111 : vector<1x256xi1>
    %113 = arith.andi %112, %11 : vector<1x256xi1>
    %114 = arith.extui %113 : vector<1x256xi1> to vector<1x256xi8>
    %c0_46 = arith.constant 0 : index
    %c0_47 = arith.constant 0 : index
    %c0_48 = arith.constant 0 : index
    %115 = vector.load %arg9[%c0_46, %c0_47, %c0_48] : memref<1x1x256xi8, #tpu.memory_space<vmem>>, vector<1x1x256xi8>
    %116 = vector.shape_cast %115 : vector<1x1x256xi8> to vector<1x256xi8>
    %117 = vector.shape_cast %114 : vector<1x256xi8> to vector<1x1x256xi8>
    tpu.vector_store %arg9[%c0_46, %c0_47, %c0_48], %117 {strides = array<i32>} : memref<1x1x256xi8, #tpu.memory_space<vmem>>, vector<1x1x256xi8>,
    return
  }
  func.func @transform_0(%arg0: i32, %arg1: i32, %arg2: memref<2x2xi32, #tpu.memory_space<smem>>) -> (i32, i32) {
    %c0_i32 = arith.constant 0 : i32
    %c0_i32_0 = arith.constant 0 : i32
    return %c0_i32, %arg1 : i32, i32
  }
  func.func @transform_1(%arg0: i32, %arg1: i32, %arg2: memref<2x2xi32, #tpu.memory_space<smem>>) -> (i32, i32, i32) {
    %c0_i32 = arith.constant 0 : i32
    %c0_i32_0 = arith.constant 0 : i32
    return %arg0, %c0_i32, %arg1 : i32, i32, i32
  }
  func.func @transform_2(%arg0: i32, %arg1: i32, %arg2: memref<2x2xi32, #tpu.memory_space<smem>>) -> (i32, i32, i32) {
    %c0_i32 = arith.constant 0 : i32
    %c0_i32_0 = arith.constant 0 : i32
    return %arg0, %c0_i32, %arg1 : i32, i32, i32
  }
  func.func @transform_3(%arg0: i32, %arg1: i32, %arg2: memref<2x2xi32, #tpu.memory_space<smem>>) -> (i32, i32, i32) {
    %c0_i32 = arith.constant 0 : i32
    %c0_i32_0 = arith.constant 0 : i32
    return %arg0, %c0_i32, %arg1 : i32, i32, i32
  }
  func.func @transform_4(%arg0: i32, %arg1: i32, %arg2: memref<2x2xi32, #tpu.memory_space<smem>>) -> (i32, i32, i32) {
    %c0_i32 = arith.constant 0 : i32
    %c0_i32_0 = arith.constant 0 : i32
    return %arg0, %c0_i32, %arg1 : i32, i32, i32
  }
  func.func @transform_5(%arg0: i32, %arg1: i32, %arg2: memref<2x2xi32, #tpu.memory_space<smem>>) -> (i32, i32, i32) {
    %c0_i32 = arith.constant 0 : i32
    %c0_i32_0 = arith.constant 0 : i32
    return %arg0, %c0_i32, %arg1 : i32, i32, i32
  }
  func.func @transform_6(%arg0: i32, %arg1: i32, %arg2: memref<2x2xi32, #tpu.memory_space<smem>>) -> (i32, i32, i32) {
    %c0_i32 = arith.constant 0 : i32
    %c0_i32_0 = arith.constant 0 : i32
    return %arg0, %c0_i32, %arg1 : i32, i32, i32
  }
  func.func @transform_7(%arg0: i32, %arg1: i32, %arg2: memref<2x2xi32, #tpu.memory_space<smem>>) -> (i32, i32, i32) {
    %c0_i32 = arith.constant 0 : i32
    %c0_i32_0 = arith.constant 0 : i32
    %c0_i32_1 = arith.constant 0 : i32
    return %arg0, %c0_i32, %c0_i32_0 : i32, i32, i32
  }
}

</mosaic_0001>

<bundles_post_ra>
// kernel: tpu_custom_call.1
= control target key start
LH: loop header
LB: loop body
LE: loop exit
PB: predicated region body
PF: predicated region fallthrough
CT: control target
= control target key end

     0   :  { %s1314_s27 = smov [#allocation3]   ;;  %s1667_s0 = inlined_call_operand.hbm [shape: s32[2,2], index: 0, kind: input, shape index: {}]   ;;  %s1668_s1 = inlined_call_operand.hbm [shape: f32[4,256], index: 1, kind: input, shape index: {}]   ;;  %s1669_s2 = inlined_call_operand.hbm [shape: f32[2,4,256], index: 2, kind: input, shape index: {}]   ;;  %s1670_s3 = inlined_call_operand.hbm [shape: f32[2,4,256], index: 3, kind: input, shape index: {}]   ;;  %s1671_s4 = inlined_call_operand.vmem [shape: f32[2,1,256], index: 4, kind: input, shape index: {}]   ;;  %s1672_s5 = inlined_call_operand.hbm [shape: bf16[2,4,256], index: 5, kind: output, shape index: {0}]   ;;  %s1673_s6 = inlined_call_operand.hbm [shape: f32[2,4,256], index: 6, kind: output, shape index: {1}]   ;;  %s1674_s7 = inlined_call_operand.vmem [shape: s8[2,1,256], index: 7, kind: output, shape index: {2}]   ;;  %s1675_s8 = inlined_call_operand.vmem [shape: s32[2,1,1], index: 8, kind: output, shape index: {3}]  }
   0x1   :  { %1681 = sst [smem:[#allocation19_spill]] %s1668_s1 }
   0x2   :  { %1682 = sst [smem:[#allocation20_spill]] %s1669_s2 }
   0x3   :  { %15 = dma.hbm_to_smem %s1667_s0, 32, %s1314_s27, [#allocation2] }
   0x4   :  { %1272 = dma.done.wait [#allocation2], 32 }
   0x5   :  { %1273 = vsyncadd [#allocation2], 4294967264 }
   0x6   :  { %17 = sfence }
   0x7   :  { %18 = vsyncpa [#allocation5], 0 }
   0x8   :  { %19 = vsyncpa [#allocation8], 0 }
   0x9   :  { %21 = vsyncpa [#allocation8 + $0x1], 0 }
   0xa   :  { %22 = vsyncpa [#allocation6], 0 }
   0xb   :  { %24 = vsyncpa [#allocation6 + $0x1], 0 }
   0xc   :  { %25 = vsyncpa [#allocation12], 0 }
   0xd   :  { %27 = vsyncpa [#allocation12 + $0x1], 0  ;;  %s1373_s30 = smov 0   ;;  %s1375_s9 = smov 0  }
   0xe   :  { %s1377_s10 = smov 0   ;;  %s1379_s11 = smov 0  }
   0xf   :  { %s1381_s12 = smov 0   ;;  %s1383_s0 = smov 0  }
  0x10 LB: > { %s45_s13 = sadd.s32 1, %s1308_s12  ;;  %s80_s14 = sadd.s32 1, %s1300_s10  ;;  %s1312_s0 = sphi %s1383_s0, %s33_s0   ;;  %s1308_s12 = sphi %s1381_s12, %s1711_s12   ;;  %s1304_s11 = sphi %s1379_s11, %s1710_s11   ;;  %s1300_s10 = sphi %s1377_s10, %s1709_s10   ;;  %s1296_s9 = sphi %s1375_s9, %s1708_s9   ;;  %s1292_s30 = sphi %s1373_s30, %s1707_s30  }
  0x11   : > { %p47_p0 = scmp.ge.s32.totalorder %s45_s13, 2  ;;  %p87_p1 = scmp.ne.s32.totalorder %s1300_s10, %s1296_s9 }
  0x12   : > { %p88_p2 = scmp.eq.s32.totalorder %s1312_s0, 0  ;;  %p1037_p5 = scmp.lt.s32.totalorder %s1312_s0, 2 }
  0x13   : > { %s1713_s13 = smov (%p47_p0, %s45_s13), 0  ;;  %s297_s16 = sand.u32 1, %s1312_s0  }
  0x14   : > { %1683 = sst [smem:[#allocation18_spill]] %s1713_s13  ;;  %p89_p4 = por %p88_p2, %p87_p1 }
  0x15   : > { %s75_s15 = ssub.s32 %s1308_s12, %s1713_s13  ;;  %s299_s17 = sand.u32 1, %s1300_s10  }
  0x16   : > { %p78_p6 = scmp.eq.s32.totalorder %s75_s15, 0  ;;  %s995_s18 = sshll.u32 %s1308_s12, 7 }
  0x17   : > { %s1423_s20 = sshll.u32 %s299_s17, 3  ;;  %s1684_s2 = sld [smem:[#allocation20_spill]] }
  0x18   : > { %s1421_s19 = scalar_select %p78_p6, %s1300_s10, %s80_s14  }
  0x19   : > { %p1430_p7 = pnand %p1037_p5, %p89_p4  ;;  %s301_s25 = scalar_lea.vmem [#allocation7], %s1423_s20 }
  0x1a   : > { %s311_s26 = sshll.u32 %s301_s25, 4  ;;  %s1435_s27 = scalar_lea.sflag [#allocation8], %s297_s16  ;;  %s312_s26 = int_to_ptr.vmem [resolvable:$true] %s311_s26 }
  0x1b   : > { %p1116_p8 = pneg %p1430_p7  ;;  %s1127_s28 = scalar_lea.vmem %s312_s26, 128 }
  0x1c   : > { %p1128_p9 = scmp.ne.s32.totalorder %s312_s26, %s1127_s28  ;;  %s1315_s29 = smov [#allocation7]  }
  0x1d   : > { %s309_s23 = scalar_lea.hbm %s1684_s2, %s995_s18  ;;  %s1132_s14 = sshll.u32 %s1315_s29, 4  ;;  %s1133_s14 = int_to_ptr.vmem [resolvable:$false] %s1132_s14 }
  0x1e   : > { %p1130_p10 = pnand %p1128_p9, %p1116_p8  ;;  %s1134_s15 = scalar_lea.vmem %s1133_s14, 256 }
  0x1f   : > { %p1135_p12 = scmp.lt.s32.totalorder %s312_s26, %s1133_s14  ;;  %p1136_p13 = scmp.lt.s32.totalorder %s1134_s15, %s1127_s28 }
  0x20   : > { %p1131_p11 = pneg %p1130_p10 }
  0x21   : > { %p1137_p0 = por %p1136_p13, %p1135_p12 }
  0x23   : > { %p1138_p2 = pnand %p1137_p0, %p1131_p11 }
  0x25   : > { %1141 = shalt.err (!%p1138_p2)
}
  0x26   : > { %1025 = dma.hbm_to_vmem [thread:$0]  (!%p1430_p7), %s309_s23, 128, %s312_s26, %s1435_s27  }
  0x27   : > { %s1446_s16 = sadd.s32 4294967295, %s1312_s0   ;;  %s961_s17 = sadd.s32 4294967294, %s1312_s0  }
  0x28   : > { %p93_p4 = scmp.ne.s32.totalorder %s1296_s9, %s1292_s30  ;;  %p1677_p5 = scmp.eq.s32.totalorder %s1446_s16, 0 }
  0x29   : > { %p175_p6 = scmp.eq.s32.totalorder %s1446_s16, 1  ;;  %p181_p9 = scmp.eq.s32.totalorder %s961_s17, 1 }
  0x2a   : > { %p962_p10 = scmp.ge.s32.totalorder %s1312_s0, 1  ;;  %p1456_p11 = por %p1677_p5, %p93_p4 }
  0x2b   : > { %p1463_p12 = por %p175_p6, %p87_p1  ;;  %p1467_p13 = por %p181_p9, %p93_p4 }
  0x2c   : > { %s1686_s21 = scalar_select %p1456_p11, 1, 0 }
  0x2d   : > { %s1687_s22 = scalar_select %p1463_p12, 1, 0 }
  0x2e   : > { %s1688_s23 = scalar_select %p1467_p13, 1, 0 }
  0x2f   : > { %p270_p0 = scmp.lt.s32.totalorder %s1312_s0, 3  ;;  %s330_s28 = scalar_lea.hbm %s1670_s3, %s995_s18 }
  0x30   : > { %s1316_s14 = smov [#allocation4]   ;;  %s322_s17 = scalar_lea.vmem [#allocation9], %s1423_s20 }
  0x31   : > { %p1477_p2 = pnand %p962_p10, %p270_p0  ;;  %s286_s15 = sshll.u32 %s1316_s14, 4  ;;  %s287_s15 = int_to_ptr.vmem [resolvable:$true] %s286_s15 }
  0x32   : > { %s332_s2 = sshll.u32 %s322_s17, 4  ;;  %s1317_s25 = smov [#allocation9]   ;;  %s333_s2 = int_to_ptr.vmem [resolvable:$true] %s332_s2 }
  0x33   : > { %s1155_s13 = scalar_lea.vmem %s333_s2, 128  ;;  %s1160_s18 = sshll.u32 %s1317_s25, 4  ;;  %s1161_s18 = int_to_ptr.vmem [resolvable:$false] %s1160_s18 }
  0x34   : > { %p1156_p4 = scmp.ne.s32.totalorder %s333_s2, %s1155_s13  ;;  %s1162_s26 = scalar_lea.vmem %s1161_s18, 256 }
  0x35   : > { %p1163_p10 = scmp.lt.s32.totalorder %s333_s2, %s1161_s18  ;;  %p1164_p0 = scmp.lt.s32.totalorder %s1162_s26, %s1155_s13 }
  0x36   : > { %p1158_p6 = pnand %p1156_p4, %p1116_p8 }
  0x37   : > { %p1165_p3 = por %p1164_p0, %p1163_p10 }
  0x38   : > { %p1159_p9 = pneg %p1158_p6 }
  0x3a   : > { %p1166_p5 = pnand %p1165_p3, %p1159_p9 }
  0x3c   : > { %1169 = shalt.err (!%p1166_p5)
}
  0x3d   : > { %1028 = dma.hbm_to_vmem [thread:$0]  (!%p1430_p7), %s330_s28, 128, %s333_s2, %s1435_s27  }
  0x3e   : > { %p1690_p1 = scmp.eq.s32.totalorder %s1446_s16, 0  ;;  %p1691_p8 = pneg %p1477_p2 }
  0x3f   : > { %s1181_s20 = scalar_lea.vmem %s287_s15, 128  ;;  %p1189_p0 = scmp.lt.s32.totalorder %s287_s15, %s287_s15 }
  0x40   : > { %p1019_p4 = pnand %p1691_p8, %p1690_p1  ;;  %p1182_p13 = scmp.ne.s32.totalorder %s287_s15, %s1181_s20 }
  0x41   : > { %p1190_p10 = scmp.lt.s32.totalorder %s1181_s20, %s1181_s20 }
  0x42   : > { %p1172_p6 = pneg %p1019_p4 }
  0x43   : > { %p1191_p3 = por %p1190_p10, %p1189_p0 }
  0x44   : > { %p1184_p12 = pnand %p1182_p13, %p1172_p6 }
  0x46   : > { %p1185_p11 = pneg %p1184_p12 }
  0x48   : > { %p1192_p5 = pnand %p1191_p3, %p1185_p11 }
  0x4a   : > { %1195 = shalt.err (!%p1192_p5)
}
  0x4b   : > { %s1692_s1 = sld [smem:[#allocation19_spill]]  ;;  %p1693_p7 = scmp.eq.s32.totalorder (!%p1477_p2), %s1446_s16, 0 }
  0x4d   : > { %353 = sbr.rel (%p1477_p2) target bundleno = 348 (0x15c), region = 36 }
  0x51   : > { %1021 = dma.hbm_to_vmem [thread:$0]  (!%p1019_p4), %s1692_s1, 128, %s287_s15, [#allocation5]  }
  0x52   : > { %1275 = dma.done.wait (%p1693_p7), [#allocation5], 128   ;;  %p1694_p1 = pmov %p1693_p7 }
  0x53   : > { %s359_s2 = sand.u32 1, %s1446_s16   ;;  %s1506_s27 = sand.u32 1, %s1296_s9  }
  0x54   : > { %1277 = vsyncadd (%p1694_p1), [#allocation5], 4294967168  ;;  %s1509_s28 = sshll.u32 %s1506_s27, 3  ;;  %s360_s14 = scalar_lea.sflag [#allocation8], %s359_s2 }
  0x55   : > { %s363_s15 = scalar_lea.vmem [#allocation7], %s1509_s28  ;;  %p1695_p11 = scmp.ne.s32.totalorder %s1686_s21, 0 }
  0x57   : > { %1279 = dma.done.wait (%p1695_p11), %s360_s14, 256  }
  0x58   : > { %1281 = vsyncadd (%p1695_p11), %s360_s14, 4294967040  ;;  %p436_p12 = scmp.lt.s32.totalorder %s1304_s11, 1  ;;  %v475_v0 = vld [vmem:[%s363_s15] sm:$0xff]  ;;  %v500_v8 = vlaneseq  ;;  %v1318_v9 = vmov 1   ;;  %vm541_vm2 = vcmask 1043456   ;;  %v1319_v19 = vmov 0.0  }
  0x59   : > { %v980_v2 = vmul.f32 -1.442695, %v475_v0  ;;  %v496_v10 = vcombine.low %v1318_v9, %v1318_v9  ;;  %s1541_s21 = sshll.u32 %s1304_s11, 7  ;;  %s372_s20 = scalar_lea.vmem [#allocation9], %s1509_s28  ;;  %v1320_v35 = vmov 1.0   ;;  %v573_v40 = vld [vmem:[#allocation4] sm:$0xff] }
  0x5a   : > { %s1518_s29 = scalar_select %p436_p12, %s1304_s11, 1  ;;  %v1526_v11 = vshrl.u32 %v500_v8, 7  ;;  %v574_v33 = vld [vmem:[%s372_s20] sm:$0xff]  ;;  %v1321_v56 = vmov 0   ;;  %vm559_vm10 = vcmask 0  }
  0x5b   : > { %1096 = vpow2.f32 %v980_v2  ;;  %vm497_vm0 = vcmp.ne.s32.totalorder %v496_v10, 0  ;;  %s463_s26 = sadd.s32 1, %s1541_s21  ;;  %s461_s13 = sld [smem:[#allocation3 + %s1541_s21]]  ;;  %v598_v34 = vcombine.high %v574_v33, %v574_v33 }
  0x5c   : > { %s977_s16 = sshll.u32 %s1518_s29, 1  ;;  %v502_v12 = vsub.s32 0, %v1526_v11  ;;  %v506_v13 = vsub.s32 1, %v1526_v11  ;;  %vm577_vm6 = vcmp.lt.s32.totalorder %v1526_v11, 2  ;;  %s464_s24 = sld [smem:[#allocation3 + %s463_s26]]  ;;  %v583_v42 = vand.u32 1, %v1526_v11 }
  0x5d   : > { %s442_s18 = scalar_lea.vmem %s1671_s4, %s977_s16  ;;  %v578_v36 = vsel %vm577_vm6, -1.0, %v1320_v35  ;;  %s1552_s26 = scalar_lea.vmem %s1675_s8, %s1518_s29 }
  0x5e   : > { %v482_v1 = vld [vmem:[%s442_s18] sm:$0x3]  ;;  %v600_v37 = vmul.f32 %v578_v36, %v574_v33  ;;  %v601_v38 = vmul.f32 %v598_v34, %v578_v36  ;;  %vm591_vm7 = vcmp.eq.s32.totalorder %v583_v42, 0  ;;  %560 = vst.msk [vmem:[%s1552_s26] sm:$0x1] %vm559_vm10, %v1321_v56  ;;  %s975_s20 = sshll.u32 %s1506_s27, 2 }
  0x5f   : > { %v981_v3 = vmul.f32 -1.442695, %v482_v1  ;;  %s1680_s25 = scalar_lea.vmem [#allocation11], %s1509_s28  ;;  %p1702_p2 = scmp.ne.s32.totalorder %s1687_s22, 0 }
  0x60   : > { %v604_v39 = vcombine.low %v600_v37, %v601_v38 }
  0x61   : > { %1098 = vpow2.f32 %v981_v3  ;;  %s462_s2 = scvt.s32.f32 %s461_s13  ;;  %s409_s13 = scalar_lea.vmem [#allocation10], %s975_s20 }
  0x62   : > { %v606_v41 = vadd.f32 %v604_v39, %v573_v40  ;;  %s465_s14 = scvt.s32.f32 %s464_s24  ;;  %s997_s24 = sshll.u32 %s1304_s11, 6 }
  0x63   : > { %s986_s15 = sadd.f32 -1.0, %s462_s2  ;;  %s715_s2 = sshll.u32 %s409_s13, 4  ;;  %s716_s2 = int_to_ptr.vmem [resolvable:$true] %s715_s2 }
  0x64   : > { %v607_v43 = vmax.f32 %v606_v41, 0.0  ;;  %s985_s17 = sadd.f32 -1.0, %s465_s14  ;;  %s1587_s20 = scalar_lea.vmem %s1674_s7, %s977_s16 }
  0x65   : > { %v595_v44 = vstv %s986_s15  ;;  %s1196_s14 = scalar_lea.vmem %s716_s2, 64 }
  0x66   : > { %v609_v45 = vcombine.high %v607_v43, %v607_v43  ;;  %v594_v46 = vstv %s985_s17  ;;  %s1573_s17 = scalar_lea.hbm %s1672_s5, %s997_s24  ;;  %p1197_p13 = scmp.ne.s32.totalorder %s716_s2, %s1196_s14 }
  0x67   : > { %v596_v47 = vsel %vm591_vm7, %v594_v46, %v595_v44  ;;  %vm676_vm7 = vsmask.f32 1024  ;;  %s1323_s24 = smov [#allocation10]  }
  0x68   : > { %v1097_v4 = vpop.eup %1096  ;;  %v611_v48 = vmin.f32 %v596_v47, %v607_v43  ;;  %v612_v49 = vmin.f32 %v596_v47, %v609_v45  ;;  %p1198_p9 = pnand %p1197_p13, %p1702_p2  ;;  %s1200_s15 = sshll.u32 %s1323_s24, 4  ;;  %s1201_s15 = int_to_ptr.vmem [resolvable:$false] %s1200_s15 }
  0x69   : > { %v479_v6 = vadd.f32 1.0, %v1097_v4  ;;  %v1322_v4 = vmov 1966171168   ;;  %p1203_p4 = scmp.lt.s32.totalorder %s716_s2, %s1201_s15 }
  0x6a   : > { %v618_v50 = vrot.slane %v611_v48, 6  ;;  %v619_v51 = vrot.slane %v612_v49, 6  ;;  %v615_v16 = vcombine.low %v611_v48, %v612_v49  ;;  %p1199_p8 = pneg %p1198_p9 }
  0x6b   : > { %1100 = vrcp.f32 %v479_v6 }
  0x6c   : > { %v622_v52 = vsub.f32 %v611_v48, %v618_v50  ;;  %v623_v53 = vsub.f32 %v612_v49, %v619_v51  ;;  %617 = vst [vmem:[%s1680_s25] sm:$0xff] %v615_v16  ;;  %s1202_s25 = scalar_lea.vmem %s1201_s15, 128 }
  0x6d   : > { %p1204_p6 = scmp.lt.s32.totalorder %s1202_s25, %s1196_s14 }
  0x6e   : > { %v1099_v5 = vpop.eup %1098  ;;  %v624_v54 = vadd.f32 1.0, %v622_v52  ;;  %v625_v55 = vadd.f32 1.0, %v623_v53 }
  0x6f   : > { %v486_v7 = vadd.f32 1.0, %v1099_v5  ;;  %v659_v5 = vunpack.c.l.s4 %v1322_v4  ;;  %p1205_p0 = por %p1204_p6, %p1203_p4 }
  0x70   : > { %vm626_vm8 = vcmp.ge.f32.partialorder %v624_v54, 0.0  ;;  %vm627_vm9 = vcmp.ge.f32.partialorder %v625_v55, 0.0 }
  0x71   : > { %1102 = vrcp.f32 %v486_v7  ;;  %v628_v57 = vsel %vm626_vm8, 1, %v1321_v56  ;;  %v629_v58 = vsel %vm627_vm9, 1, %v1321_v56  ;;  %v660_v9 = vunpack.c.0.s8 %v659_v5  ;;  %p1206_p10 = pnand %p1205_p0, %p1199_p8 }
  0x72   : > { %v630_v59 = vrot.slane %v628_v57, 1  ;;  %v631_v60 = vrot.slane %v629_v58, 1 }
  0x73   : > { %v663_v10 = vsub.s32 %v660_v9, %v1526_v11 }
  0x74   : > { %vm632_vm11 = vcmp.ne.s32.totalorder %v630_v59, 0  ;;  %vm633_vm12 = vcmp.ne.s32.totalorder %v631_v60, 0 }
  0x75   : > { %vm634_vm13 = vmand %vm626_vm8, %vm632_vm11 }
  0x76   : > { %vm635_vm14 = vmand %vm627_vm9, %vm633_vm12 }
  0x77   : > { %vm638_vm15 = vmpackc.low %vm635_vm14, %vm634_vm13 }
  0x78   : > { %v1101_v14 = vpop.eup %1100 }
  0x79   : > { %vm489_vm1 = vcmp.gt.f32.partialorder %v1101_v14, 0.5 }
  0x7a   : > { %vm1530_vm3 = vmand %vm489_vm1, %vm497_vm0 }
  0x7b   : > { %v984_v20 = vsel %vm1530_vm3, 1.0, %v1319_v19  ;;  %vm639_vm0 = vmpackc.even %vm638_vm15, %vm638_vm15 }
  0x7c   : > { %v539_v22 = vcombine.high %v984_v20, %v984_v20  ;;  %v542_v23 = vsel %vm541_vm2, %v984_v20, 0.0  ;;  %v640_v61 = vsel %vm639_vm0, 16843009, %v1321_v56 }
  0x7d   : > { %v641_v62 = vunpack.c.0.s8 %v640_v61  ;;  %v642_v63 = vunpack.c.1.s8 %v640_v61 }
  0x7e   : > { %v1103_v15 = vpop.eup %1102  ;;  %v543_v25 = vsel %vm541_vm2, %v539_v22, 0.0 }
  0x7f   : > { %v503_v17 = vrot.slane %v1103_v15, %v502_v12  ;;  %v507_v18 = vrot.slane %v1103_v15, %v506_v13  ;;  %v544_v26 = vadd.f32 %v543_v25, %v542_v23  ;;  %v643_v0 = vpack.c.b16 %v641_v62, %v641_v62 }
  0x80   : > { %v645_v1 = vpack.c.b16 %v642_v63, %v642_v63 }
  0x81   : > { %v508_v21 = vcombine.low %v503_v17, %v507_v18  ;;  %545 = vadd.xlane.f32.xlu0 %v544_v26  ;;  %v644_v2 = vpack.c.b8 %v643_v0, %v643_v0 }
  0x82   : > { %v646_v3 = vpack.c.b8 %v645_v1, %v645_v1 }
  0x83   : > { %v510_v24 = vmul.f32 %v1101_v14, %v508_v21  ;;  %v648_v7 = vshrl.u32 %v644_v2, 16 }
  0x84   : > { %v651_v8 = vshrl.u32 %v646_v3, 16 }
  0x85   : > { %1104 = vrsqrt.f32 %v510_v24  ;;  %vm513_vm4 = vcmp.eq.f32.partialorder %v510_v24, inf  ;;  %v516_v28 = vand.u32 2147483648, %v510_v24  ;;  %vm515_vm5 = vcmp.eq.f32.partialorder %v510_v24, 0.0 }
  0x86   : > { %vm653_vm1 = vnez %v648_v7  ;;  %vm654_vm2 = vnez %v651_v8 }
  0x87   : > { %v655_v13 = vsel %vm653_vm1, 16843009, %v1321_v56  ;;  %v656_v14 = vsel %vm654_vm2, 16843009, %v1321_v56 }
  0x88   : > { %v657_v15 = vcombine.low %v655_v13, %v656_v14 }
  0x8a   : > { %v664_v17 = vrot.slane %v657_v15, %v663_v10 }
  0x8c   : > { %v671_v19 = vrot.slane %v664_v17, %v663_v10 }
  0x92   : > { %v1105_v27 = vpop.eup %1104 }
  0x93   : > { %v512_v29 = vmul.f32 %v1105_v27, %v510_v24 }
  0x95   : > { %v514_v30 = vsel %vm513_vm4, %v510_v24, %v512_v29  ;;  %vm673_vm4 = vsmask.f32 0 }
  0x96   : > { %v517_v31 = vsel %vm515_vm5, %v516_v28, %v514_v30  ;;  %vm675_vm5 = vcmask 1041409  }
  0x97   : > { %v1538_v32 = vsel %vm1530_vm3, %v517_v31, -1.0  ;;  %vm672_vm3 = vcmask 1040384   ;;  %vm1566_vm8 = vmand %vm675_vm5, %vm676_vm7 }
  0x98   : > { %v520_v6 = vcombine.high %v1538_v32, %v1538_v32  ;;  %vm1561_vm6 = vmand %vm672_vm3, %vm673_vm4 }
  0x99   : > { %vm678_vm9 = vmor %vm1566_vm8, %vm1561_vm6 }
  0x9a   : > { %v982_v12 = vpack.c.bf16 %v520_v6, %v1538_v32 }
  0x9c   : > { %983 = vst.sshfl [vmem:[%s409_s13] sm:$0x33 pattern:$0x76325410] %v982_v12  ;;  %s683_s13 = scalar_lea.sflag [#allocation6], %s1506_s27 }
  0x9d   : > { %1209 = shalt.err (!%p1206_p10)
}
  0x9e   : > { %s1210_s29 = scalar_lea.hbm %s1573_s17, 64  ;;  %s1214_s18 = scalar_lea.hbm %s1672_s5, 128 }
  0x9f   : > { %p1211_p3 = scmp.ne.s32.totalorder %s1573_s17, %s1210_s29  ;;  %p1215_p1 = scmp.lt.s32.totalorder %s1573_s17, %s1672_s5 }
  0xa0   : > { %p1216_p11 = scmp.lt.s32.totalorder %s1214_s18, %s1210_s29 }
  0xa1   : > { %p1212_p5 = pnand %p1211_p3, %p1702_p2 }
  0xa2   : > { %p1217_p12 = por %p1216_p11, %p1215_p1 }
  0xa3   : > { %p1213_p7 = pneg %p1212_p5 }
  0xa5   : > { %p1218_p13 = pnand %p1217_p12, %p1213_p7 }
  0xa7   : > { %1221 = shalt.err (!%p1218_p13)
}
  0xa8   : > { %1014 = dma.vmem_to_hbm [thread:$0]  (%p1702_p2), %s716_s2, 64, %s1573_s17, %s683_s13   ;;  %v679_v20 = vld [vmem:[%s1587_s20] sm:$0x3] }
  0xa9   : > { %v680_v21 = vsel %vm678_vm9, %v671_v19, %v679_v20  ;;  %s1616_s14 = scalar_lea.hbm %s1673_s6, %s1541_s21  ;;  %s1703_s15 = scalar_lea.vmem [#allocation11], %s1509_s28 }
  0xaa   : > { %681 = vst [vmem:[%s1587_s20] sm:$0x3] %v680_v21  ;;  %s731_s29 = sshll.u32 %s1703_s15, 4  ;;  %s688_s16 = scalar_lea.sflag [#allocation12], %s1506_s27  ;;  %s732_s29 = int_to_ptr.vmem [resolvable:$true] %s731_s29 }
  0xab   : > { %s1222_s11 = scalar_lea.vmem %s732_s29, 128  ;;  %s1324_s2 = smov [#allocation11]  }
  0xac   : > { %p1223_p9 = scmp.ne.s32.totalorder %s732_s29, %s1222_s11  ;;  %s1226_s17 = sshll.u32 %s1324_s2, 4  ;;  %s1227_s17 = int_to_ptr.vmem [resolvable:$false] %s1226_s17 }
  0xad   : > { %s1228_s13 = scalar_lea.vmem %s1227_s17, 256  ;;  %p1229_p6 = scmp.lt.s32.totalorder %s732_s29, %s1227_s17 }
  0xae   : > { %p1224_p8 = pnand %p1223_p9, %p1702_p2  ;;  %p1230_p0 = scmp.lt.s32.totalorder %s1228_s13, %s1222_s11 }
  0xb0   : > { %p1225_p4 = pneg %p1224_p8  ;;  %p1231_p10 = por %p1230_p0, %p1229_p6 }
  0xb2   : > { %p1232_p3 = pnand %p1231_p10, %p1225_p4 }
  0xb4   : > { %1235 = shalt.err (!%p1232_p3)
}
  0xb5   : > { %s1236_s28 = scalar_lea.hbm %s1616_s14, 128  ;;  %s1240_s20 = scalar_lea.hbm %s1673_s6, 256 }
  0xb6   : > { %p1237_p5 = scmp.ne.s32.totalorder %s1616_s14, %s1236_s28  ;;  %p1241_p11 = scmp.lt.s32.totalorder %s1616_s14, %s1673_s6 }
  0xb7   : > { %p1242_p12 = scmp.lt.s32.totalorder %s1240_s20, %s1236_s28 }
  0xb8   : > { %p1238_p7 = pnand %p1237_p5, %p1702_p2 }
  0xb9   : > { %p1243_p13 = por %p1242_p12, %p1241_p11 }
  0xba   : > { %p1239_p1 = pneg %p1238_p7 }
  0xbc   : > { %p1244_p9 = pnand %p1243_p13, %p1239_p1 }
  0xbe   : > { %1247 = shalt.err (!%p1244_p9)
}
  0xbf   : > { %1015 = dma.vmem_to_hbm [thread:$0]  (%p1702_p2), %s732_s29, 128, %s1616_s14, %s688_s16   ;;  %v561_v29 = vld [vmem:[%s1552_s26] sm:$0x1] }
 0x10a   : > { %v546_v22 = vpop.xlane.xlu0 %545 }
 0x10b   : > { %v547_v23 = vrot.slane %v546_v22, 4 }
 0x10d   : > { %v548_v24 = vadd.f32 %v547_v23, %v546_v22 }
 0x10f   : > { %v549_v25 = vrot.slane %v548_v24, 2 }
 0x111   : > { %v550_v26 = vadd.f32 %v549_v25, %v548_v24 }
 0x113   : > { %v551_v27 = vrot.slane %v550_v26, 1 }
 0x115   : > { %v552_v28 = vadd.f32 %v551_v27, %v550_v26 }
 0x117   : > { %999 = vpush %v552_v28 }
 0x148   : > { %s1000_s1 = spop %999 }
 0x149   : > { %p1001_p8 = scmp.lt.s32.totalorder %s1000_s1, 0  ;;  %s1002_s25 = sceil.f32 %s1000_s1 }
 0x14a   : > { %s1003_s15 = sfloor.f32 %s1000_s1 }
 0x14b   : > { %s1715_s25 = smov (!%p1001_p8, %s1002_s25), %s1003_s15 }
 0x14c   : > { %s1005_s22 = scvt.f32.s32 %s1715_s25 }
 0x14e   : > { %v562_v30 = vstv %s1005_s22 }
 0x14f   : > { %v563_v31 = vadd.s32 %v562_v30, %v561_v29 }
 0x151   : > { %565 = vst.msk [vmem:[%s1552_s26] sm:$0x1] %vm559_vm10, %v563_v31 }
 0x158   : > { %v569_v32 = vld [vmem:[%s1552_s26] sm:$0x1] }
 0x159   : > { %vm570_vm11 = vcmp.lt.s32.totalorder %v569_v32, 100 }
 0x15a   : > { %v571_v33 = vsel %vm570_vm11, %v569_v32, 100 }
 0x15b   : > { %572 = vst.msk [vmem:[%s1552_s26] sm:$0x1] %vm559_vm10, %v571_v33 }
 0x15c PF: > { %s750_s14 = sand.u32 1, %s1292_s30   ;;  %p1704_p2 = scmp.ne.s32.totalorder %s1688_s23, 0 }
 0x15d   : > { %p1705_p4 = scmp.ge.s32.totalorder %s1312_s0, 2  ;;  %s751_s29 = scalar_lea.sflag [#allocation6], %s750_s14 }
 0x15f   : > { %p1030_p6 = pnand %p1705_p4, %p1704_p2 }
 0x161   : > { %p1031_p0 = pneg %p1030_p6 }
 0x163   : > { %1283 = dma.done.wait (%p1031_p0), %s751_s29, 64  }
 0x164   : > { %1285 = vsyncadd (%p1031_p0), %s751_s29, 4294967232  ;;  %s760_s16 = scalar_lea.sflag [#allocation12], %s750_s14 }
 0x165   : > { %1287 = dma.done.wait (%p1031_p0), %s760_s16, 128  }
 0x166   : > { %1289 = vsyncadd (%p1031_p0), %s760_s16, 4294967168  ;;  %s33_s0 = sadd.s32 1, %s1312_s0   ;;  %s1706_s26 = sld [smem:[#allocation18_spill]] }
 0x167   : > { %p30_p10 = scmp.ge.s32.totalorder %s33_s0, 4   ;;  %s1707_s30 = smov %s1296_s9 }
 0x168   : > { %s1708_s9 = smov %s1300_s10  ;;  %s1709_s10 = smov %s1421_s19 }
 0x169   : > { %s1710_s11 = smov %s1308_s12  ;;  %32 = sbr.rel (!%p30_p10) target bundleno = 16 (0x10), region = 150 }
 0x16c   : > { %s1711_s12 = smov %s1706_s26 }
 0x16e   :  { %782 = vsyncpa [#allocation5], 1 }
 0x16f   :  { %784 = vsyncpa [#allocation5 + $0x1], 1 }
 0x170   :  { %785 = vsyncpa [#allocation8], 1 }
 0x171   :  { %787 = vsyncpa [#allocation8 + $0x1], 1 }
 0x172   :  { %788 = vsyncpa [#allocation6], 1 }
 0x173   :  { %790 = vsyncpa [#allocation6 + $0x1], 1 }
 0x174   :  { %791 = vsyncpa [#allocation12], 1 }
 0x175   :  { %793 = vsyncpa [#allocation12 + $0x1], 1 }

</bundles_post_ra>
